<compile_context>
chip_gen: v6e
topology: v6e:2x2x1
jax: 0.10.0
libtpu: 0.0.40
codegen_flags: <defaults>
</compile_context>

<pallas_src>
import functools

import jax
import jax.numpy as jnp
from jax import lax
from jax.experimental import pallas as pl
from jax.experimental.pallas import tpu as pltpu

NEG_INF = -1e30                      # finite sentinel: exp() underflows to 0, never NaN
_VMEM_BUDGET = 24 * 1024 * 1024      # per-kernel block budget (v7x-safe)
_VMEM_LIMIT = 48 * 1024 * 1024       # explicit scoped-VMEM limit (< physical on all gens)


def _round_up(x, m):
    return (x + m - 1) // m * m


# ---------------------------------------------------------------------------
# Stage 1: fused q/k/v projection (runs once; hoisted out of the kv loop).
# ---------------------------------------------------------------------------
def _qkv_proj_kernel(x_ref, w_ref, q_ref, k_ref, v_ref, *, scale):
    hp = q_ref.shape[-1]
    qkv = jnp.dot(x_ref[...], w_ref[...], preferred_element_type=jnp.float32)
    q_ref[...] = (qkv[:, :hp] * scale).astype(q_ref.dtype)       # fold 1/sqrt(C) into q
    k_ref[...] = qkv[:, hp:2 * hp].astype(k_ref.dtype)
    v_ref[...] = qkv[:, 2 * hp:].astype(v_ref.dtype)


# ---------------------------------------------------------------------------
# Stage 2: flash attention with online softmax.
#   grid = (batch_blocks, q_blocks, kv_blocks); kv axis last ("arbitrary").
# ---------------------------------------------------------------------------
def _flash_attn_kernel(q_ref, k_ref, v_ref, o_ref, m_scr, l_scr, acc_scr):
    blk_q = q_ref.shape[1]
    blk_k = k_ref.shape[1]
    qi = pl.program_id(1)
    ki = pl.program_id(2)
    n_kv = pl.num_programs(2)

    @pl.when(ki == 0)
    def _init():
        m_scr[...] = jnp.full(m_scr.shape, NEG_INF, dtype=m_scr.dtype)
        l_scr[...] = jnp.zeros(l_scr.shape, dtype=l_scr.dtype)
        acc_scr[...] = jnp.zeros(acc_scr.shape, dtype=acc_scr.dtype)

    def scores():
        # q already carries the 1/sqrt(C) scale; contract last dims (no k transpose).
        return jnp.einsum("bqh,bkh->bqk", q_ref[...], k_ref[...],
                          preferred_element_type=jnp.float32)

    def online_softmax_update(s):
        m_prev = m_scr[...]
        m_new = jnp.maximum(m_prev, s.max(axis=-1, keepdims=True))
        alpha = jnp.exp(m_prev - m_new)
        p = jnp.exp(s - m_new)
        l_scr[...] = alpha * l_scr[...] + p.sum(axis=-1, keepdims=True)
        acc_scr[...] = alpha * acc_scr[...] + jnp.einsum(
            "bqk,bkh->bqh", p.astype(v_ref.dtype), v_ref[...],
            preferred_element_type=jnp.float32)
        m_scr[...] = m_new

    # Interior tiles (strictly below the diagonal block): no mask needed.
    @pl.when(ki < qi)
    def _interior():
        online_softmax_update(scores())

    # Diagonal tile: apply the causal mask (q_start == k_start, so local indices suffice;
    # 2-D iotas broadcast over the batch-block dim).
    @pl.when(ki == qi)
    def _diagonal():
        row = lax.broadcasted_iota(jnp.int32, (blk_q, blk_k), 0)
        col = lax.broadcasted_iota(jnp.int32, (blk_q, blk_k), 1)
        s = jnp.where((col <= row)[None, :, :], scores(), NEG_INF)
        online_softmax_update(s)

    # Tiles with ki > qi lie entirely above the diagonal: compute is skipped and their
    # DMA is elided by the clamped kv index_map in the wrapper.

    @pl.when(ki == n_kv - 1)
    def _finalize():
        # Exact divide (tiny: blk*Hp elems per q tile); keeps numerics tight vs reference.
        o_ref[...] = (acc_scr[...] / l_scr[...]).astype(o_ref.dtype)


# ---------------------------------------------------------------------------
# Tile selection helpers (simple VMEM budgeting; v7x-safe).
# ---------------------------------------------------------------------------
def _pick_seq_block(T):
    # 256 keeps MXU shapes full on every generation and fits v7x's 64 MiB/TC VMEM.
    # (v5e/v6e with 128 MiB VMEM could use 512.)
    if T >= 256:
        return 256
    return _round_up(T, 8)


def _pick_batch_block(B, n_q, blk, Hp, itemsize):
    fitting = []
    for bb in (8, 4, 2, 1):
        if B % bb:
            continue
        vmem = 4 * 2 * bb * blk * Hp * itemsize + bb * blk * (Hp + 2) * 4
        if vmem <= _VMEM_BUDGET:
            fitting.append(bb)
    if not fitting:
        return 1
    for bb in fitting:                       # largest first
        if (B // bb) * n_q >= 2:             # keep >=2 parallel steps for v7x's 2 TCs
            return bb
    return fitting[-1]


def _pick_proj_rows(rows, C, Hp, itemsize):
    for tm in (512, 256, 128, 64, 32, 16, 8):
        if rows % tm:
            continue
        vmem = 2 * itemsize * (tm * C + C * 3 * Hp + 3 * tm * Hp)
        if vmem <= _VMEM_BUDGET:
            return tm
    return 8


# ---------------------------------------------------------------------------
# Wrapper.
# ---------------------------------------------------------------------------
def head_forward(x, w_q, w_k, w_v):
    """x: (B, T, C); w_*: (C, H) (= nn.Linear.weight.T). Returns (B, T, H)."""
    B, T, C = x.shape
    H = w_q.shape[1]
    dtype = x.dtype
    itemsize = jnp.dtype(dtype).itemsize
    Hp = _round_up(H, 128)                    # lane-dense head dim
    scale = float(C) ** -0.5                  # module quirk: scale by n_embd, not head_size

    # Fused zero-padded weight slab (C, 3*Hp) = [Wq | Wk | Wv]; zero columns are exact no-ops.
    pad = ((0, 0), (0, Hp - H))
    w_qkv = jnp.concatenate(
        [jnp.pad(w_q, pad), jnp.pad(w_k, pad), jnp.pad(w_v, pad)], axis=1).astype(dtype)

    blk = _pick_seq_block(T)
    T_pad = _round_up(T, blk)
    n_q = T_pad // blk
    bb = _pick_batch_block(B, n_q, blk, Hp, itemsize)

    if T_pad != T:
        # Padded keys land above the causal diagonal (masked); padded query rows are
        # sliced off at the end.
        x = jnp.pad(x, ((0, 0), (0, T_pad - T), (0, 0)))

    # ---- Stage 1: q/k/v projection, computed once. ----
    rows = B * T_pad
    x2d = x.reshape(rows, C)
    tm = _pick_proj_rows(rows, C, Hp, itemsize)
    q2d, k2d, v2d = pl.pallas_call(
        functools.partial(_qkv_proj_kernel, scale=scale),
        out_shape=(
            jax.ShapeDtypeStruct((rows, Hp), dtype),
            jax.ShapeDtypeStruct((rows, Hp), dtype),
            jax.ShapeDtypeStruct((rows, Hp), dtype),
        ),
        grid_spec=pltpu.PrefetchScalarGridSpec(
            num_scalar_prefetch=0,
            grid=(rows // tm,),
            in_specs=[
                pl.BlockSpec((tm, C), lambda i: (i, 0)),
                pl.BlockSpec((C, 3 * Hp), lambda i: (0, 0)),   # constant weight slab
            ],
            out_specs=[
                pl.BlockSpec((tm, Hp), lambda i: (i, 0)),
                pl.BlockSpec((tm, Hp), lambda i: (i, 0)),
                pl.BlockSpec((tm, Hp), lambda i: (i, 0)),
            ],
        ),
        compiler_params=pltpu.CompilerParams(
            dimension_semantics=("parallel",),
            vmem_limit_bytes=_VMEM_LIMIT,
        ),
    )(x2d, w_qkv)
    q = q2d.reshape(B, T_pad, Hp)
    k = k2d.reshape(B, T_pad, Hp)
    v = v2d.reshape(B, T_pad, Hp)

    # ---- Stage 2: flash attention. ----
    q_index = lambda b, qi, ki: (b, qi, 0)
    kv_index = lambda b, qi, ki: (b, jnp.minimum(ki, qi), 0)   # elide above-diagonal DMAs

    out = pl.pallas_call(
        _flash_attn_kernel,
        out_shape=jax.ShapeDtypeStruct((B, T_pad, Hp), dtype),
        grid_spec=pltpu.PrefetchScalarGridSpec(
            num_scalar_prefetch=0,
            grid=(B // bb, n_q, n_q),
            in_specs=[
                pl.BlockSpec((bb, blk, Hp), q_index),
                pl.BlockSpec((bb, blk, Hp), kv_index),
                pl.BlockSpec((bb, blk, Hp), kv_index),
            ],
            out_specs=pl.BlockSpec((bb, blk, Hp), q_index),
            scratch_shapes=[
                pltpu.VMEM((bb, blk, 1), jnp.float32),    # running max m
                pltpu.VMEM((bb, blk, 1), jnp.float32),    # running denominator l
                pltpu.VMEM((bb, blk, Hp), jnp.float32),   # output accumulator
            ],
        ),
        compiler_params=pltpu.CompilerParams(
            dimension_semantics=("parallel", "parallel", "arbitrary"),
            vmem_limit_bytes=_VMEM_LIMIT,
        ),
    )(q, k, v)

    return out[:, :T, :H]


# ---------------------------------------------------------------------------
# Pure-JAX reference (high-precision f32, matching the PyTorch forward exactly).
# ---------------------------------------------------------------------------
def head_reference(x, w_q, w_k, w_v):
    B, T, C = x.shape
    hi = lax.Precision.HIGHEST
    q = jnp.einsum("btc,ch->bth", x, w_q, precision=hi)
    k = jnp.einsum("btc,ch->bth", x, w_k, precision=hi)
    v = jnp.einsum("btc,ch->bth", x, w_v, precision=hi)
    wei = jnp.einsum("bth,bsh->bts", q, k, precision=hi) * (C ** -0.5)
    tril = jnp.tril(jnp.ones((T, T), dtype=bool))
    wei = jnp.where(tril[None], wei, -jnp.inf)
    wei = jax.nn.softmax(wei, axis=-1)
    return jnp.einsum("bts,bsh->bth", wei, v, precision=hi)


if __name__ == "__main__":
    # Pin accurate f32 matmuls everywhere (reference einsums AND the in-kernel dots),
    # so the comparison is not polluted by TPU default bf16/tf32 matmul precision.
    jax.config.update("jax_default_matmul_precision", "highest")

    n_embd, head_size = 32, 16
    key = jax.random.PRNGKey(0)
    kx, kwq, kwk, kwv = jax.random.split(key, 4)
    w_q = jax.random.normal(kwq, (n_embd, head_size), dtype=jnp.float32) * (n_embd ** -0.5)
    w_k = jax.random.normal(kwk, (n_embd, head_size), dtype=jnp.float32) * (n_embd ** -0.5)
    w_v = jax.random.normal(kwv, (n_embd, head_size), dtype=jnp.float32) * (n_embd ** -0.5)

    # Case 1: B=2, T=8 (no sequence padding). Case 2: B=2, T=12 (exercises padding path).
    for (B, T) in ((2, 8), (2, 12)):
        kx, sub = jax.random.split(kx)
        x = jax.random.normal(sub, (B, T, n_embd), dtype=jnp.float32)

        out = jax.block_until_ready(head_forward(x, w_q, w_k, w_v))
        ref = jax.block_until_ready(head_reference(x, w_q, w_k, w_v))

        assert out.shape == (B, T, head_size)
        max_err = float(jnp.max(jnp.abs(out - ref)))
        assert jnp.allclose(out, ref, atol=2e-3, rtol=2e-3), (
            f"mismatch vs reference at B={B}, T={T}: max abs err {max_err}")

    print("KERNEL_OK")
</pallas_src>

<mosaic_0001>
module attributes {stable_mosaic.version = 11 : i64} {
  func.func @_qkv_proj_kernel(%arg0: i32, %arg1: memref<16x32xf32, #tpu.memory_space<vmem>>, %arg2: memref<32x384xf32, #tpu.memory_space<vmem>>, %arg3: memref<16x128xf32, #tpu.memory_space<vmem>>, %arg4: memref<16x128xf32, #tpu.memory_space<vmem>>, %arg5: memref<16x128xf32, #tpu.memory_space<vmem>>) attributes {dimension_semantics = [#tpu.dimension_semantics<parallel>], iteration_bounds = array<i64: 1>, scalar_prefetch = 0 : i64, scratch_operands = 0 : i64, tpu.core_type = #tpu.core_type<tc>, window_params = [{transform_indices = @transform_0, window_bounds = array<i64: 16, 32>}, {pipeline_mode = #tpu.pipeline_mode<synchronous>, transform_indices = @transform_1, window_bounds = array<i64: 32, 384>}, {transform_indices = @transform_2, window_bounds = array<i64: 16, 128>}, {transform_indices = @transform_3, window_bounds = array<i64: 16, 128>}, {transform_indices = @transform_4, window_bounds = array<i64: 16, 128>}]} {
    %c0 = arith.constant 0 : index
    %c0_0 = arith.constant 0 : index
    %0 = vector.load %arg1[%c0, %c0_0] : memref<16x32xf32, #tpu.memory_space<vmem>>, vector<16x32xf32>
    %c0_1 = arith.constant 0 : index
    %c0_2 = arith.constant 0 : index
    %1 = vector.load %arg2[%c0_1, %c0_2] : memref<32x384xf32, #tpu.memory_space<vmem>>, vector<32x384xf32>
    %cst = arith.constant dense<0.000000e+00> : vector<16x384xf32>
    %2 = tpu.matmul %0, %1, %cst {dimension_numbers = #tpu.dot_dimension_numbers<[1], [0], [0], [1], [0, 0, 1, 1], [], []>, precision = #tpu.contract_precision<fp32>} : vector<16x32xf32>, vector<32x384xf32>, vector<16x384xf32> -> vector<16x384xf32>
    %3 = vector.extract_strided_slice %2 {offsets = [0, 0], sizes = [16, 128], strides = [1, 1]} : vector<16x384xf32> to vector<16x128xf32>
    %cst_3 = arith.constant 0.176776692 : f32
    %4 = vector.broadcast %cst_3 : f32 to vector<16x128xf32>
    %5 = arith.mulf %3, %4 : vector<16x128xf32>
    %c0_4 = arith.constant 0 : index
    %c0_5 = arith.constant 0 : index
    %6 = vector.load %arg3[%c0_4, %c0_5] : memref<16x128xf32, #tpu.memory_space<vmem>>, vector<16x128xf32>
    tpu.vector_store %arg3[%c0_4, %c0_5], %5 {strides = array<i32>} : memref<16x128xf32, #tpu.memory_space<vmem>>, vector<16x128xf32>,
    %7 = vector.extract_strided_slice %2 {offsets = [0, 128], sizes = [16, 128], strides = [1, 1]} : vector<16x384xf32> to vector<16x128xf32>
    %c0_6 = arith.constant 0 : index
    %c0_7 = arith.constant 0 : index
    %8 = vector.load %arg4[%c0_6, %c0_7] : memref<16x128xf32, #tpu.memory_space<vmem>>, vector<16x128xf32>
    tpu.vector_store %arg4[%c0_6, %c0_7], %7 {strides = array<i32>} : memref<16x128xf32, #tpu.memory_space<vmem>>, vector<16x128xf32>,
    %9 = vector.extract_strided_slice %2 {offsets = [0, 256], sizes = [16, 128], strides = [1, 1]} : vector<16x384xf32> to vector<16x128xf32>
    %c0_8 = arith.constant 0 : index
    %c0_9 = arith.constant 0 : index
    %10 = vector.load %arg5[%c0_8, %c0_9] : memref<16x128xf32, #tpu.memory_space<vmem>>, vector<16x128xf32>
    tpu.vector_store %arg5[%c0_8, %c0_9], %9 {strides = array<i32>} : memref<16x128xf32, #tpu.memory_space<vmem>>, vector<16x128xf32>,
    return
  }
  func.func @transform_0(%arg0: i32) -> (i32, i32) {
    %c0_i32 = arith.constant 0 : i32
    %c0_i32_0 = arith.constant 0 : i32
    return %arg0, %c0_i32 : i32, i32
  }
  func.func @transform_1(%arg0: i32) -> (i32, i32) {
    %c0_i32 = arith.constant 0 : i32
    %c0_i32_0 = arith.constant 0 : i32
    %c0_i32_1 = arith.constant 0 : i32
    return %c0_i32, %c0_i32_0 : i32, i32
  }
  func.func @transform_2(%arg0: i32) -> (i32, i32) {
    %c0_i32 = arith.constant 0 : i32
    %c0_i32_0 = arith.constant 0 : i32
    return %arg0, %c0_i32 : i32, i32
  }
  func.func @transform_3(%arg0: i32) -> (i32, i32) {
    %c0_i32 = arith.constant 0 : i32
    %c0_i32_0 = arith.constant 0 : i32
    return %arg0, %c0_i32 : i32, i32
  }
  func.func @transform_4(%arg0: i32) -> (i32, i32) {
    %c0_i32 = arith.constant 0 : i32
    %c0_i32_0 = arith.constant 0 : i32
    return %arg0, %c0_i32 : i32, i32
  }
}

</mosaic_0001>

<bundles_post_ra>
// kernel: tpu_custom_call.1
= control target key start
LH: loop header
LB: loop body
LE: loop exit
PB: predicated region body
PF: predicated region fallthrough
CT: control target
= control target key end

     0   :  { %10 = vsyncpa [#allocation3], 0  ;;  %s1739_s0 = inlined_call_operand.hbm [shape: f32[16,32], index: 0, kind: input, shape index: {}]   ;;  %s1740_s1 = inlined_call_operand.hbm [shape: f32[32,384], index: 1, kind: input, shape index: {}]   ;;  %s1741_s2 = inlined_call_operand.hbm [shape: f32[16,128], index: 2, kind: output, shape index: {0}]   ;;  %s1742_s3 = inlined_call_operand.hbm [shape: f32[16,128], index: 3, kind: output, shape index: {1}]   ;;  %s1743_s4 = inlined_call_operand.hbm [shape: f32[16,128], index: 4, kind: output, shape index: {2}]  }
   0x1   :  { %11 = vsyncpa [#allocation6], 0 }
   0x2   :  { %12 = vsyncpa [#allocation4], 0 }
   0x3   :  { %13 = vsyncpa [#allocation9], 0  ;;  %s1462_s15 = smov [#allocation2]  }
   0x4   :  { %s19_s16 = sshll.u32 %s1462_s15, 4  ;;  %s20_s16 = int_to_ptr.vmem [resolvable:$true] %s19_s16 }
   0x5   :  { %s1362_s17 = scalar_lea.vmem %s20_s16, 256  ;;  %p1367_p1 = scmp.lt.s32.totalorder %s20_s16, %s20_s16 }
   0x6   :  { %p1363_p0 = scmp.ne.s32.totalorder %s20_s16, %s1362_s17  ;;  %p1368_p2 = scmp.lt.s32.totalorder %s1362_s17, %s1362_s17 }
   0x8   :  { %p1369_p3 = por %p1368_p2, %p1367_p1 }
   0xa   :  { %p1370_p4 = pnand %p1369_p3, %p1363_p0 }
   0xc   :  { %1373 = shalt.err (!%p1370_p4)
}
   0xd   :  { %s1463_s18 = smov 128   ;;  %s1464_s19 = smov 8  }
   0xe   :  { %25 = dma.hbm_to_vmem [thread:$0]  %s1739_s0, 256, %s20_s16, [#allocation3], %s1463_s18, %s1463_s18, %s1464_s19  }
   0xf   :  { %s1465_s22 = smov [#allocation5]  }
  0x10   :  { %s31_s23 = sshll.u32 %s1465_s22, 4  ;;  %s32_s23 = int_to_ptr.vmem [resolvable:$true] %s31_s23 }
  0x11   :  { %s1382_s24 = scalar_lea.vmem %s32_s23, 1536  ;;  %p1387_p6 = scmp.lt.s32.totalorder %s32_s23, %s32_s23 }
  0x12   :  { %p1383_p5 = scmp.ne.s32.totalorder %s32_s23, %s1382_s24  ;;  %p1388_p7 = scmp.lt.s32.totalorder %s1382_s24, %s1382_s24 }
  0x14   :  { %p1389_p8 = por %p1388_p7, %p1387_p6 }
  0x16   :  { %p1390_p9 = pnand %p1389_p8, %p1383_p5 }
  0x18   :  { %1393 = shalt.err (!%p1390_p9)
}
  0x19   :  { %s1466_s25 = smov 384   ;;  %s1467_s26 = smov 24  }
  0x1a   :  { %37 = dma.hbm_to_vmem [thread:$0]  %s1740_s1, 1536, %s32_s23, [#allocation6], %s1466_s25, %s1466_s25, %s1467_s26  }
  0x1b   :  { %1454 = dma.done.wait [#allocation3], 256  }
  0x1c   :  { %1455 = vsyncadd [#allocation3], 4294967040 }
  0x1d   :  { %1456 = dma.done.wait [#allocation6], 1536  }
  0x1e   :  { %1457 = vsyncadd [#allocation6], 4294965760  ;;  %v1468_v0 = vmov 0.0   ;;  %v56_v1 = vld [vmem:[#allocation5 + $0x50] sm:$0xff]  ;;  %v55_v2 = vld [vmem:[#allocation5 + $0x48] sm:$0xff]  ;;  %vm58_vm0 = vcmask 261120  }
  0x1f   :  { %137 = vmatprep.mubr.f32.mxu0 %v1468_v0  ;;  %264 = vmatprep.mubr.f32.mxu1 %v1468_v0  ;;  %v53_v3 = vld [vmem:[#allocation5 + $0x38] sm:$0xff]  ;;  %v1508_v4 = vand.u32 4294901760, %v56_v1  ;;  %v1510_v5 = vand.u32 4294901760, %v55_v2  ;;  %v52_v7 = vld [vmem:[#allocation5 + $0x30] sm:$0xff]  ;;  %v50_v8 = vld [vmem:[#allocation5 + $0x20] sm:$0xff]  ;;  %s1469_s0 = smov [#allocation8]  }
  0x20   :  { %v1512_v6 = vand.u32 4294901760, %v53_v3  ;;  %v49_v9 = vld [vmem:[#allocation5 + $0x18] sm:$0xff]  ;;  %v1514_v10 = vand.u32 4294901760, %v52_v7  ;;  %v1516_v11 = vand.u32 4294901760, %v50_v8  ;;  %v47_v13 = vld [vmem:[#allocation5 + $0x8] sm:$0xff]  ;;  %v46_v14 = vld [vmem:[#allocation5] sm:$0xff] }
  0x21   :  { %v1518_v12 = vand.u32 4294901760, %v49_v9  ;;  %v44_v15 = vld [vmem:[#allocation2] sm:$0xff]  ;;  %90 = vmatprep.subr.mxu0 %v1508_v4  ;;  %v1521_v16 = vand.u32 4294901760, %v47_v13  ;;  %v1524_v17 = vsub.f32 %v56_v1, %v1508_v4  ;;  %v1526_v18 = vand.u32 4294901760, %v46_v14  ;;  %v45_v20 = vld [vmem:[#allocation2 + $0x8] sm:$0xff]  ;;  %v54_v1 = vld [vmem:[#allocation5 + $0x40] sm:$0xff] }
  0x22   :  { %v1529_v19 = vsub.f32 %v55_v2, %v1510_v5  ;;  %92 = vmatpush1.msra.mxu0 %v1510_v5  ;;  %v60_v21 = vsel %vm58_vm0, %v44_v15, 0  ;;  %v1534_v22 = vsub.f32 %v53_v3, %v1512_v6  ;;  %v1537_v23 = vsub.f32 %v52_v7, %v1514_v10  ;;  %v57_v63 = vld [vmem:[#allocation5 + $0x58] sm:$0xff]  ;;  %v51_v7 = vld [vmem:[#allocation5 + $0x28] sm:$0xff]  ;;  %s1210_s1 = sshll.u32 %s1469_s0, 4  ;;  %s1470_s29 = smov [#allocation7]   ;;  %s1211_s1 = int_to_ptr.vmem [resolvable:$true] %s1210_s1 }
  0x23   :  { %v1540_v24 = vsub.f32 %v50_v8, %v1516_v11  ;;  %94 = vmatprep.subr.mxu0 %v1512_v6  ;;  %v186_v25 = vand.u32 4294901760, %v1524_v17  ;;  %v1545_v27 = vand.u32 4294901760, %v60_v21  ;;  %v1548_v28 = vsub.f32 %v49_v9, %v1518_v12  ;;  %v48_v9 = vld [vmem:[#allocation5 + $0x10] sm:$0xff]  ;;  %s1198_s30 = sshll.u32 %s1470_s29, 4  ;;  %s1394_s5 = scalar_lea.vmem %s1211_s1, 256  ;;  %s1199_s30 = int_to_ptr.vmem [resolvable:$true] %s1198_s30 }
  0x24   :  { %v192_v26 = vand.u32 4294901760, %v1529_v19  ;;  %96 = vmatpush1.msra.mxu0 %v1514_v10  ;;  %v198_v29 = vand.u32 4294901760, %v1534_v22  ;;  %v204_v30 = vand.u32 4294901760, %v1537_v23  ;;  %v63_v32 = vsel %vm58_vm0, %v45_v20, 0  ;;  %p1395_p10 = scmp.ne.s32.totalorder %s1211_s1, %s1394_s5  ;;  %p1399_p11 = scmp.lt.s32.totalorder %s1211_s1, %s1211_s1 }
  0x25   :  { %v210_v31 = vand.u32 4294901760, %v1540_v24  ;;  %98 = vmatprep.subr.mxu0 %v1516_v11  ;;  %v187_v33 = vsub.f32 %v1524_v17, %v186_v25  ;;  %v1563_v35 = vsub.f32 %v60_v21, %v1545_v27  ;;  %v216_v36 = vand.u32 4294901760, %v1548_v28  ;;  %p1400_p12 = scmp.lt.s32.totalorder %s1394_s5, %s1394_s5 }
  0x26   :  { %v193_v34 = vsub.f32 %v1529_v19, %v192_v26  ;;  %100 = vmatpush1.msra.mxu0 %v1518_v12  ;;  %v199_v37 = vsub.f32 %v1534_v22, %v198_v29  ;;  %v205_v38 = vsub.f32 %v1537_v23, %v204_v30  ;;  %v1576_v40 = vand.u32 4294901760, %v63_v32 }
  0x27   :  { %v211_v39 = vsub.f32 %v1540_v24, %v210_v31  ;;  %102 = vmatprep.subr.mxu0 %v1521_v16  ;;  %v188_v41 = vand.u32 4294901760, %v187_v33  ;;  %v1580_v43 = vand.u32 4294901760, %v1563_v35  ;;  %v217_v44 = vsub.f32 %v1548_v28, %v216_v36  ;;  %p1401_p13 = por %p1400_p12, %p1399_p11 }
  0x28   :  { %v194_v42 = vand.u32 4294901760, %v193_v34  ;;  %104 = vmatpush1.msra.mxu0 %v1526_v18  ;;  %v200_v45 = vand.u32 4294901760, %v199_v37  ;;  %v206_v46 = vand.u32 4294901760, %v205_v38  ;;  %v1587_v47 = vsub.f32 %v63_v32, %v1576_v40 }
  0x29   :  { %189 = vmatprep.subr.mxu1 %v188_v41  ;;  %v141_v48 = vsub.f32 %v1563_v35, %v1580_v43  ;;  %305 = vmatprep.subr.mxu0 %v1524_v17  ;;  %v212_v49 = vand.u32 4294901760, %v211_v39  ;;  %v221_v50 = vsub.f32 %v47_v13, %v1521_v16  ;;  %v1594_v51 = vsub.f32 %v46_v14, %v1526_v18  ;;  %p1402_p0 = pnand %p1401_p13, %p1395_p10 }
  0x2a   :  { %195 = vmatpush1.msra.mxu1 %v194_v42  ;;  %v1597_v52 = vand.u32 4294901760, %v1587_v47  ;;  %v218_v54 = vand.u32 4294901760, %v217_v44  ;;  %v1626_v2 = vand.u32 4294901760, %v57_v63  ;;  %v1634_v3 = vand.u32 4294901760, %v54_v1 }
  0x2b   :  { %v1599_v53 = vand.u32 4294901760, %v141_v48  ;;  %201 = vmatprep.subr.mxu1 %v200_v45  ;;  %v222_v55 = vand.u32 4294901760, %v221_v50  ;;  %v228_v56 = vand.u32 4294901760, %v1594_v51  ;;  %v1647_v13 = vand.u32 4294901760, %v51_v7 }
  0x2c   :  { %207 = vmatpush1.msra.mxu1 %v206_v46  ;;  %v152_v57 = vsub.f32 %v1587_v47, %v1597_v52  ;;  %v772_v8 = vsub.f32 %v57_v63, %v1626_v2  ;;  %v779_v14 = vsub.f32 %v54_v1, %v1634_v3  ;;  %v1654_v15 = vand.u32 4294901760, %v48_v9 }
  0x2d   :  { %143 = vmatmul.mubr.f32.vlgmr.msra.gmra.mxu0 %v1599_v53  ;;  %213 = vmatprep.subr.mxu1 %v212_v49  ;;  %v223_v58 = vsub.f32 %v221_v50, %v222_v55  ;;  %v229_v59 = vsub.f32 %v1594_v51, %v228_v56  ;;  %v786_v20 = vsub.f32 %v51_v7, %v1647_v13 }
  0x2e   :  { %308 = vmatpush1.msra.mxu0 %v1529_v19  ;;  %148 = vmatprep.mubr.f32.mxu0 %v1468_v0  ;;  %v1608_v60 = vand.u32 4294901760, %v152_v57  ;;  %v1656_v17 = vand.u32 4294901760, %v772_v8  ;;  %v1661_v19 = vand.u32 4294901760, %v779_v14  ;;  %v793_v21 = vsub.f32 %v48_v9, %v1654_v15 }
  0x2f   :  { %311 = vmatprep.subr.mxu0 %v1534_v22  ;;  %219 = vmatpush1.msra.mxu1 %v218_v54  ;;  %v224_v61 = vand.u32 4294901760, %v223_v58  ;;  %v230_v62 = vand.u32 4294901760, %v229_v59 }
  0x30   :  { %314 = vmatpush1.msra.mxu0 %v1537_v23  ;;  %v794_v22 = vand.u32 4294901760, %v793_v21 }
  0x31   :  { %154 = vmatmul.mubr.f32.gmra.mxu0 %v1608_v60  ;;  %225 = vmatprep.subr.mxu1 %v224_v61 }
  0x32   :  { %317 = vmatprep.subr.mxu0 %v1540_v24  ;;  %231 = vmatpush1.msra.mxu1 %v230_v62 }
  0x33   :  { %320 = vmatpush1.msra.mxu0 %v1548_v28  ;;  %266 = vmatmul.mubr.f32.vlgmr.msra.gmra.mxu1 %v1545_v27 }
  0x34   :  { %323 = vmatprep.subr.mxu0 %v221_v50  ;;  %401 = vmatprep.subr.mxu1 %v1508_v4 }
  0x35   :  { %326 = vmatpush1.msra.mxu0 %v1594_v51  ;;  %359 = vmatprep.mubr.f32.mxu0 %v1468_v0 }
  0x36   :  { %403 = vmatpush1.msra.mxu1 %v1510_v5  ;;  %362 = vmatmul.mubr.f32.vlgmr.msra.gmra.mxu0 %v1563_v35 }
  0x37   :  { %405 = vmatprep.subr.mxu1 %v1512_v6  ;;  %494 = vmatprep.subr.mxu0 %v186_v25 }
  0x38   :  { %271 = vmatprep.mubr.f32.mxu1 %v1468_v0  ;;  %407 = vmatpush1.msra.mxu1 %v1514_v10 }
  0x39   :  { %498 = vmatpush1.msra.mxu0 %v192_v26  ;;  %273 = vmatmul.mubr.f32.gmra.mxu1 %v1576_v40 }
  0x3a   :  { %409 = vmatprep.subr.mxu1 %v1516_v11  ;;  %502 = vmatprep.subr.mxu0 %v198_v29 }
  0x3b   :  { %367 = vmatprep.mubr.f32.mxu0 %v1468_v0  ;;  %411 = vmatpush1.msra.mxu1 %v1518_v12 }
  0x3c   :  { %506 = vmatpush1.msra.mxu0 %v204_v30  ;;  %413 = vmatprep.subr.mxu1 %v1521_v16 }
  0x3d   :  { %370 = vmatmul.mubr.f32.gmra.mxu0 %v1587_v47  ;;  %510 = vmatprep.subr.mxu0 %v210_v31 }
  0x3e   :  { %415 = vmatpush1.msra.mxu1 %v1526_v18  ;;  %448 = vmatprep.mubr.f32.mxu1 %v1468_v0 }
  0x3f   :  { %514 = vmatpush1.msra.mxu0 %v216_v36  ;;  %452 = vmatmul.mubr.f32.vlgmr.msra.gmra.mxu1 %v1580_v43 }
  0x40   :  { %518 = vmatprep.subr.mxu0 %v222_v55  ;;  %595 = vmatprep.subr.mxu1 %v1508_v4  ;;  %v774_v4 = vsub.f32 %v772_v8, %v1656_v17 }
  0x41   :  { %522 = vmatpush1.msra.mxu0 %v228_v56  ;;  %555 = vmatprep.mubr.f32.mxu0 %v1468_v0 }
  0x42   :  { %597 = vmatpush1.msra.mxu1 %v1510_v5  ;;  %557 = vmatmul.mubr.f32.vlgmr.msra.gmra.mxu0 %v1545_v27  ;;  %v781_v5 = vsub.f32 %v779_v14, %v1661_v19 }
  0x43   :  { %599 = vmatprep.subr.mxu1 %v1512_v6  ;;  %1278 = vmatprep.subr.mxu0 %v1626_v2  ;;  %v787_v6 = vand.u32 4294901760, %v786_v20 }
  0x44   :  { %457 = vmatprep.mubr.f32.mxu1 %v1468_v0  ;;  %601 = vmatpush1.msra.mxu1 %v1514_v10  ;;  %v775_v10 = vand.u32 4294901760, %v774_v4 }
  0x45   :  { %1279 = vmatpush3.msra.mxu0 %v1626_v2  ;;  %461 = vmatmul.mubr.f32.gmra.mxu1 %v1597_v52  ;;  %v788_v23 = vsub.f32 %v786_v20, %v787_v6 }
  0x46   :  { %603 = vmatprep.subr.mxu1 %v1516_v11  ;;  %1280 = vmatprep.subr.mxu0 %v1634_v3  ;;  %v782_v11 = vand.u32 4294901760, %v781_v5 }
  0x47   :  { %562 = vmatprep.mubr.f32.mxu0 %v1468_v0  ;;  %605 = vmatpush1.msra.mxu1 %v1518_v12  ;;  %v795_v12 = vsub.f32 %v793_v21, %v794_v22 }
  0x48   :  { %1281 = vmatpush3.msra.mxu0 %v1634_v3  ;;  %607 = vmatprep.subr.mxu1 %v1521_v16  ;;  %v789_v16 = vand.u32 4294901760, %v788_v23 }
  0x49   :  { %564 = vmatmul.mubr.f32.gmra.mxu0 %v1576_v40  ;;  %1282 = vmatprep.subr.mxu0 %v1647_v13 }
  0x4a   :  { %609 = vmatpush1.msra.mxu1 %v1526_v18  ;;  %642 = vmatprep.mubr.f32.mxu1 %v1468_v0  ;;  %v796_v18 = vand.u32 4294901760, %v795_v12 }
  0x4b   :  { %1283 = vmatpush3.msra.mxu0 %v1647_v13  ;;  %644 = vmatmul.mubr.f32.vlgmr.msra.gmra.mxu1 %v1545_v27 }
  0x4c   :  { %1284 = vmatprep.subr.mxu0 %v1654_v15  ;;  %1289 = vmatprep.subr.mxu1 %v775_v10 }
  0x4d   :  { %1285 = vmatpush3.msra.mxu0 %v1654_v15  ;;  %1290 = vmatpush3.msra.mxu1 %v775_v10 }
  0x4e   :  { %1286 = vmatprep.mubr.f32.mxu0 %v1599_v53  ;;  %1291 = vmatprep.subr.mxu1 %v782_v11 }
  0x4f   :  { %1300 = vmatprep.subr.mxu0 %v772_v8  ;;  %649 = vmatprep.mubr.f32.mxu1 %v1468_v0 }
  0x50   :  { %1287 = vmatmul.mubr.f32.vlgmr.msra.gmra.mxu0 %v1608_v60  ;;  %1292 = vmatpush3.msra.mxu1 %v782_v11 }
  0x51   :  { %1301 = vmatpush3.msra.mxu0 %v772_v8  ;;  %651 = vmatmul.mubr.f32.gmra.mxu1 %v1576_v40 }
  0x52   :  { %1293 = vmatprep.subr.mxu1 %v789_v16  ;;  %1302 = vmatprep.subr.mxu0 %v779_v14 }
  0x53   :  { %1294 = vmatpush3.msra.mxu1 %v789_v16  ;;  %1303 = vmatpush3.msra.mxu0 %v779_v14 }
  0x54   :  { %1295 = vmatprep.subr.mxu1 %v796_v18  ;;  %1304 = vmatprep.subr.mxu0 %v786_v20 }
  0x55   :  { %1296 = vmatpush3.msra.mxu1 %v796_v18  ;;  %1297 = vmatprep.mubr.f32.mxu1 %v1545_v27 }
  0x56   :  { %1305 = vmatpush3.msra.mxu0 %v786_v20  ;;  %1298 = vmatmul.mubr.f32.vlgmr.msra.gmra.mxu1 %v1576_v40 }
  0x57   :  { %1306 = vmatprep.subr.mxu0 %v793_v21  ;;  %1311 = vmatprep.subr.mxu1 %v1626_v2 }
  0x58   :  { %1307 = vmatpush3.msra.mxu0 %v793_v21  ;;  %1308 = vmatprep.mubr.f32.mxu0 %v1563_v35 }
  0x59   :  { %1312 = vmatpush3.msra.mxu1 %v1626_v2  ;;  %1309 = vmatmul.mubr.f32.vlgmr.msra.gmra.mxu0 %v1587_v47 }
  0x5a   :  { %1313 = vmatprep.subr.mxu1 %v1634_v3  ;;  %1322 = vmatprep.subr.mxu0 %v1656_v17 }
  0x5b   :  { %1314 = vmatpush3.msra.mxu1 %v1634_v3  ;;  %1323 = vmatpush3.msra.mxu0 %v1656_v17 }
  0x5c   :  { %1315 = vmatprep.subr.mxu1 %v1647_v13  ;;  %1324 = vmatprep.subr.mxu0 %v1661_v19 }
  0x5d   :  { %1316 = vmatpush3.msra.mxu1 %v1647_v13  ;;  %1325 = vmatpush3.msra.mxu0 %v1661_v19 }
  0x5e   :  { %1317 = vmatprep.subr.mxu1 %v1654_v15  ;;  %1326 = vmatprep.subr.mxu0 %v787_v6 }
  0x5f   :  { %1318 = vmatpush3.msra.mxu1 %v1654_v15  ;;  %1319 = vmatprep.mubr.f32.mxu1 %v1580_v43 }
  0x60   :  { %1327 = vmatpush3.msra.mxu0 %v787_v6  ;;  %1320 = vmatmul.mubr.f32.vlgmr.msra.gmra.mxu1 %v1597_v52 }
  0x61   :  { %1328 = vmatprep.subr.mxu0 %v794_v22  ;;  %1333 = vmatprep.subr.mxu1 %v1626_v2 }
  0x62   :  { %1329 = vmatpush3.msra.mxu0 %v794_v22  ;;  %1330 = vmatprep.mubr.f32.mxu0 %v1545_v27 }
  0x63   :  { %1334 = vmatpush3.msra.mxu1 %v1626_v2  ;;  %1331 = vmatmul.mubr.f32.vlgmr.msra.gmra.mxu0 %v1576_v40 }
  0x64   :  { %1335 = vmatprep.subr.mxu1 %v1634_v3  ;;  %1341 = vmatprep.mubr.f32.mxu1 %v1545_v27 }
  0x65   :  { %1336 = vmatpush3.msra.mxu1 %v1634_v3 }
  0x66   :  { %1337 = vmatprep.subr.mxu1 %v1647_v13 }
  0x67   :  { %1338 = vmatpush3.msra.mxu1 %v1647_v13 }
  0x68   :  { %1339 = vmatprep.subr.mxu1 %v1654_v15 }
  0x69   :  { %1340 = vmatpush3.msra.mxu1 %v1654_v15 }
  0x6a   :  { %1342 = vmatmul.mubr.f32.vlgmr.msra.gmra.mxu1 %v1576_v40 }
  0xed   :  { %v144_v0 = vpop.f32.mrf.mxu0 }
  0xef   :  { %v146_v24 = vpop.f32.mrf.mxu0 }
  0xf1   :  { %v155_v25 = vpop.f32.mrf.mxu0 }
  0xf3   :  { %v157_v26 = vpop.f32.mrf.mxu0  ;;  %v267_v28 = vpop.f32.mrf.mxu1 }
  0xf4   :  { %v268_v36 = vadd.f32 %v267_v28, %v144_v0 }
  0xf5   :  { %v269_v29 = vpop.f32.mrf.mxu1 }
  0xf6   :  { %v363_v30 = vpop.f32.mrf.mxu0  ;;  %v270_v38 = vadd.f32 %v269_v29, %v146_v24 }
  0xf7   :  { %v364_v41 = vadd.f32 %v363_v30, %v268_v36 }
  0xf8   :  { %v365_v31 = vpop.f32.mrf.mxu0 }
  0xf9   :  { %v274_v27 = vpop.f32.mrf.mxu1  ;;  %v366_v43 = vadd.f32 %v365_v31, %v270_v38 }
  0xfa   :  { %v275_v40 = vadd.f32 %v274_v27, %v155_v25 }
  0xfb   :  { %v276_v32 = vpop.f32.mrf.mxu1 }
  0xfc   :  { %v277_v47 = vadd.f32 %v276_v32, %v157_v26 }
  0xfd   :  { %v371_v33 = vpop.f32.mrf.mxu0 }
  0xfe   :  { %v372_v49 = vadd.f32 %v371_v33, %v275_v40 }
  0xff   :  { %v373_v34 = vpop.f32.mrf.mxu0  ;;  %v453_v35 = vpop.f32.mrf.mxu1 }
 0x100   :  { %v454_v44 = vadd.f32 %v453_v35, %v364_v41  ;;  %v374_v53 = vadd.f32 %v373_v34, %v277_v47 }
 0x101   :  { %v455_v37 = vpop.f32.mrf.mxu1 }
 0x102   :  { %v558_v39 = vpop.f32.mrf.mxu0  ;;  %v456_v48 = vadd.f32 %v455_v37, %v366_v43 }
 0x103   :  { %v559_v50 = vadd.f32 %v558_v39, %v454_v44 }
 0x104   :  { %v560_v45 = vpop.f32.mrf.mxu0 }
 0x105   :  { %v462_v42 = vpop.f32.mrf.mxu1  ;;  %v561_v55 = vadd.f32 %v560_v45, %v456_v48 }
 0x106   :  { %v463_v54 = vadd.f32 %v462_v42, %v372_v49 }
 0x107   :  { %v464_v46 = vpop.f32.mrf.mxu1 }
 0x108   :  { %v465_v58 = vadd.f32 %v464_v46, %v374_v53 }
 0x109   :  { %v565_v51 = vpop.f32.mrf.mxu0 }
 0x10a   :  { %v566_v62 = vadd.f32 %v565_v51, %v463_v54 }
 0x10b   :  { %v645_v52 = vpop.f32.mrf.mxu1  ;;  %v567_v61 = vpop.f32.mrf.mxu0 }
 0x10c   :  { %v646_v56 = vadd.f32 %v645_v52, %v559_v50  ;;  %v568_v1 = vadd.f32 %v567_v61, %v465_v58 }
 0x10d   :  { %v647_v57 = vpop.f32.mrf.mxu1 }
 0x10e   :  { %v1185_v59 = vmul.f32 0.17677669, %v646_v56  ;;  %v648_v60 = vadd.f32 %v647_v57, %v561_v55 }
 0x110   :  { %1187 = vst [vmem:[#allocation7] sm:$0xff] %v1185_v59  ;;  %1189 = vst [vmem:[#allocation8] sm:$0xff] %v648_v60  ;;  %v1288_v9 = vpop.f32.mrf.mxu0 }
 0x111   :  { %v652_v63 = vpop.f32.mrf.mxu1 }
 0x112   :  { %v653_v2 = vadd.f32 %v652_v63, %v566_v62 }
 0x113   :  { %v654_v3 = vpop.f32.mrf.mxu1 }
 0x114   :  { %v1186_v7 = vmul.f32 0.17677669, %v653_v2  ;;  %v655_v8 = vadd.f32 %v654_v3, %v568_v1 }
 0x116   :  { %1188 = vst [vmem:[#allocation7 + $0x8] sm:$0xff] %v1186_v7  ;;  %1190 = vst [vmem:[#allocation8 + $0x8] sm:$0xff] %v655_v8 }
 0x117   :  { %1405 = shalt.err (!%p1402_p0)
}
 0x118   :  { %1216 = dma.vmem_to_hbm [thread:$0]  %s1211_s1, 256, %s1742_s3, [#allocation9], %s1463_s18, %s1463_s18, %s1464_s19  }
 0x119   :  { %s1414_s8 = scalar_lea.vmem %s1199_s30, 256  ;;  %p1419_p2 = scmp.lt.s32.totalorder %s1199_s30, %s1199_s30 }
 0x11a   :  { %p1415_p1 = scmp.ne.s32.totalorder %s1199_s30, %s1414_s8  ;;  %p1420_p3 = scmp.lt.s32.totalorder %s1414_s8, %s1414_s8 }
 0x11c   :  { %p1421_p4 = por %p1420_p3, %p1419_p2 }
 0x11e   :  { %p1422_p5 = pnand %p1421_p4, %p1415_p1 }
 0x120   :  { %1425 = shalt.err (!%p1422_p5)
}
 0x121   :  { %1204 = dma.vmem_to_hbm [thread:$0]  %s1199_s30, 256, %s1741_s2, [#allocation4], %s1463_s18, %s1463_s18, %s1464_s19   ;;  %v732_v13 = vpop.f32.mrf.mxu0  ;;  %v1299_v14 = vpop.f32.mrf.mxu1 }
 0x122   :  { %v840_v19 = vadd.f32 %v1299_v14, %v1288_v9  ;;  %s1471_s3 = smov [#allocation10]  }
 0x123   :  { %v833_v15 = vpop.f32.mrf.mxu1  ;;  %v1310_v17 = vpop.f32.mrf.mxu0  ;;  %s1222_s11 = sshll.u32 %s1471_s3, 4  ;;  %s1223_s11 = int_to_ptr.vmem [resolvable:$true] %s1222_s11 }
 0x124   :  { %v834_v4 = vadd.f32 %v833_v15, %v732_v13  ;;  %v927_v5 = vadd.f32 %v1310_v17, %v840_v19  ;;  %s1434_s2 = scalar_lea.vmem %s1223_s11, 256  ;;  %p1439_p7 = scmp.lt.s32.totalorder %s1223_s11, %s1223_s11 }
 0x125   :  { %v1321_v20 = vpop.f32.mrf.mxu1  ;;  %v919_v21 = vpop.f32.mrf.mxu0  ;;  %p1435_p6 = scmp.ne.s32.totalorder %s1223_s11, %s1434_s2  ;;  %p1440_p8 = scmp.lt.s32.totalorder %s1434_s2, %s1434_s2 }
 0x126   :  { %v920_v22 = vadd.f32 %v919_v21, %v834_v4  ;;  %v1012_v11 = vadd.f32 %v1321_v20, %v927_v5 }
 0x127   :  { %v1003_v6 = vpop.f32.mrf.mxu1  ;;  %v1332_v10 = vpop.f32.mrf.mxu0  ;;  %p1441_p9 = por %p1440_p8, %p1439_p7 }
 0x128   :  { %v1004_v23 = vadd.f32 %v1003_v6, %v920_v22  ;;  %v1101_v16 = vadd.f32 %v1332_v10, %v1012_v11 }
 0x129   :  { %v1094_v12 = vpop.f32.mrf.mxu0  ;;  %p1442_p10 = pnand %p1441_p9, %p1435_p6 }
 0x12a   :  { %v1343_v18 = vpop.f32.mrf.mxu1  ;;  %v1095_v0 = vadd.f32 %v1094_v12, %v1004_v23 }
 0x12b   :  { %v1182_v24 = vadd.f32 %v1343_v18, %v1101_v16 }
 0x12c   :  { %v1175_v25 = vpop.f32.mrf.mxu1 }
 0x12d   :  { %1192 = vst [vmem:[#allocation10 + $0x8] sm:$0xff] %v1182_v24  ;;  %v1176_v26 = vadd.f32 %v1175_v25, %v1095_v0 }
 0x12f   :  { %1191 = vst [vmem:[#allocation10] sm:$0xff] %v1176_v26 }
 0x130   :  { %1445 = shalt.err (!%p1442_p10)
}
 0x131   :  { %1228 = dma.vmem_to_hbm [thread:$0]  %s1223_s11, 256, %s1743_s4, [#allocation9], %s1463_s18, %s1463_s18, %s1464_s19  }
 0x132   :  { %1458 = dma.done.wait [#allocation4], 256  }
 0x133   :  { %1459 = vsyncadd [#allocation4], 4294967040 }
 0x134   :  { %1460 = dma.done.wait [#allocation9], 512  }
 0x135   :  { %1461 = vsyncadd [#allocation9], 4294966784 }
 0x136   :  { %1238 = vsyncpa [#allocation3], 1 }
 0x137   :  { %1239 = vsyncpa [#allocation6], 1 }
 0x138   :  { %1240 = vsyncpa [#allocation4], 1 }
 0x139   :  { %1241 = vsyncpa [#allocation9], 1 }

</bundles_post_ra>
